<compile_context>
chip_gen: v7x
topology: tpu7x:2x2x1
jax: 0.10.0
libtpu: 0.0.40
codegen_flags: <defaults>
</compile_context>

<pallas_src>
import jax
import jax.numpy as jnp
from jax.experimental import pallas as pl
from jax.experimental.pallas import tpu as pltpu


def _ffn_kernel(x_ref, w1_ref, b1_ref, w2_ref, b2_ref, o_ref):
    # x_ref:  (n_blk, C,  t_hw)  channels on sublanes, pixels on lanes
    # w1_ref: (Cp, C)            conv1 weight (output channels zero-padded)
    # b1_ref: (Cp, 1)  f32
    # w2_ref: (Cp, Cp)           conv2 weight (in/out channels zero-padded)
    # b2_ref: (Cp, 1)  f32
    # o_ref:  (n_blk, Cp, t_hw)
    w1 = w1_ref[...]
    b1 = b1_ref[...]
    w2 = w2_ref[...]
    b2 = b2_ref[...]
    # Small static unroll over the batch block keeps every matmul a plain 2-D
    # (Cp, C) @ (C, t_hw) on the MXU (no batched-dot relayouts).
    for i in range(x_ref.shape[0]):
        x = x_ref[i]                                               # (C, t_hw), native dtype
        h = jnp.dot(w1, x, preferred_element_type=jnp.float32)     # (Cp, t_hw) f32 acc
        h = jnp.maximum(h + b1, 0.0)                               # bias + ReLU on f32
        # dropout: eval/inference mode -> identity
        h = h.astype(w2.dtype)
        y = jnp.dot(w2, h, preferred_element_type=jnp.float32) + b2
        o_ref[i] = y.astype(o_ref.dtype)


def _largest_dividing_tile(total, upper):
    """Largest multiple of 128 that divides `total` (itself a 128-multiple) and
    is <= max(upper, 128)."""
    t = min(total, max(128, (upper // 128) * 128))
    while total % t:
        t -= 128
    return t


def positionwise_feed_forward(x_nchw, w1, b1, w2, b2, *,
                              x_tile_budget_bytes=2 * 1024 * 1024,
                              max_batch_block=8,
                              compute_dtype=None):
    """x_nchw: (N, C, H, W); w1/w2: (C_out, C_in) from the 1x1 convs; b1/b2: (C,)."""
    orig_dtype = x_nchw.dtype
    if compute_dtype is not None:
        # bf16 (etc.) streaming path: halves HBM bytes on a bandwidth-bound kernel.
        x_nchw = x_nchw.astype(compute_dtype)
        w1 = w1.astype(compute_dtype)
        w2 = w2.astype(compute_dtype)

    N, C, H, W = x_nchw.shape
    HW = H * W
    dt = x_nchw.dtype
    wdt = w1.dtype
    itemsize = jnp.dtype(dt).itemsize

    # ---- layout: (N, C, H, W) -> (N, C, HW); pure reshape, no transpose ----
    x3d = x_nchw.reshape(N, C, HW)

    # Pad pixel axis to a multiple of 128 -> lane-dense, unmasked loads/stores.
    HWp = ((HW + 127) // 128) * 128
    if HWp != HW:
        x3d = jnp.pad(x3d, ((0, 0), (0, 0), (0, HWp - HW)))

    # ---- tile selection driven by a VMEM byte budget (kernel is mem-bound) ----
    t_hw = _largest_dividing_tile(HWp, max(128, x_tile_budget_bytes // (C * itemsize)))
    per_img_bytes = C * t_hw * itemsize
    n_blk = int(max(1, min(N, x_tile_budget_bytes // per_img_bytes, max_batch_block)))
    while N % n_blk:
        n_blk -= 1

    # v7x megacore: keep at least 2 grid steps on a parallel axis.
    if (N // n_blk) * (HWp // t_hw) < 2:
        if N >= 2:
            n_blk = max(d for d in range(1, N // 2 + 1) if N % d == 0)
        elif HWp >= 256:
            t_hw = _largest_dividing_tile(HWp, HWp // 2)

    # ---- pad output channels to the dtype-native sublane multiple -------------
    pack = max(4 // jnp.dtype(dt).itemsize, 4 // jnp.dtype(wdt).itemsize, 1)
    sub = 8 * pack                          # 8 (f32), 16 (bf16), 32 (int8/fp8)
    Cp = max(sub, ((C + sub - 1) // sub) * sub)
    # Zero-padding is sound: padded W1 rows / b1 entries give relu(0)=0, padded W2
    # columns contribute nothing, padded output rows are sliced off by XLA.
    w1p = jnp.zeros((Cp, C), wdt).at[:C, :].set(w1)
    w2p = jnp.zeros((Cp, Cp), wdt).at[:C, :C].set(w2)
    b1p = jnp.zeros((Cp, 1), jnp.float32).at[:C, 0].set(b1.astype(jnp.float32))
    b2p = jnp.zeros((Cp, 1), jnp.float32).at[:C, 0].set(b2.astype(jnp.float32))

    grid = (N // n_blk, HWp // t_hw)

    # ---- VMEM accounting: 2x streamed tiles + single-buffered weights ---------
    x_tile_b = n_blk * C * t_hw * itemsize
    o_tile_b = n_blk * Cp * t_hw * itemsize
    w_b = (Cp * C + Cp * Cp) * jnp.dtype(wdt).itemsize + 2 * Cp * 4
    vmem_need = 2 * (x_tile_b + o_tile_b) + w_b
    # Request actual need + headroom; cap safely below v7x's 64 MiB physical VMEM.
    vmem_limit = int(min(max(2 * vmem_need + (2 << 20), 16 << 20), 48 << 20))

    res = pl.pallas_call(
        _ffn_kernel,
        out_shape=jax.ShapeDtypeStruct((N, Cp, HWp), dt),
        grid_spec=pltpu.PrefetchScalarGridSpec(
            num_scalar_prefetch=0,
            grid=grid,
            in_specs=[
                pl.BlockSpec((n_blk, C, t_hw), lambda n, p: (n, 0, p)),   # x tile
                pl.BlockSpec((Cp, C), lambda n, p: (0, 0),
                             pipeline_mode=pl.Buffered(1)),               # W1 (resident)
                pl.BlockSpec((Cp, 1), lambda n, p: (0, 0),
                             pipeline_mode=pl.Buffered(1)),               # b1
                pl.BlockSpec((Cp, Cp), lambda n, p: (0, 0),
                             pipeline_mode=pl.Buffered(1)),               # W2 (resident)
                pl.BlockSpec((Cp, 1), lambda n, p: (0, 0),
                             pipeline_mode=pl.Buffered(1)),               # b2
            ],
            out_specs=pl.BlockSpec((n_blk, Cp, t_hw), lambda n, p: (n, 0, p)),
        ),
        compiler_params=pltpu.CompilerParams(
            dimension_semantics=("parallel", "parallel"),
            vmem_limit_bytes=vmem_limit,
        ),
    )(x3d, w1p, b1p, w2p, b2p)

    # Un-pad channels / pixels in XLA (keeps the kernel's store tile 8-aligned).
    out = res[:, :C, :HW].reshape(N, C, H, W)
    if compute_dtype is not None:
        out = out.astype(orig_dtype)
    return out


def _reference(x_nchw, w1, b1, w2, b2):
    # Pure-JAX reference of the same math (eval-mode dropout), NCHW layout.
    x = x_nchw.astype(jnp.float32)
    h = jnp.einsum("oi,nihw->nohw", w1.astype(jnp.float32), x) \
        + b1.astype(jnp.float32)[None, :, None, None]
    h = jnp.maximum(h, 0.0)
    y = jnp.einsum("oi,nihw->nohw", w2.astype(jnp.float32), h) \
        + b2.astype(jnp.float32)[None, :, None, None]
    return y.astype(x_nchw.dtype)


if __name__ == "__main__":
    key = jax.random.PRNGKey(0)
    N, C, H, W = 2, 4, 16, 16  # input shape (NCHW), channels=4

    k_x, k_w1, k_b1, k_w2, k_b2 = jax.random.split(key, 5)
    x = jax.random.normal(k_x, (N, C, H, W), dtype=jnp.float32)

    # Deterministic parameter init (uniform, like PyTorch conv default scale 1/sqrt(fan_in))
    bound = 1.0 / jnp.sqrt(jnp.float32(C))
    w1 = jax.random.uniform(k_w1, (C, C), jnp.float32, -bound, bound)  # (C_out, C_in)
    b1 = jax.random.uniform(k_b1, (C,), jnp.float32, -bound, bound)
    w2 = jax.random.uniform(k_w2, (C, C), jnp.float32, -bound, bound)
    b2 = jax.random.uniform(k_b2, (C,), jnp.float32, -bound, bound)

    out = positionwise_feed_forward(x, w1, b1, w2, b2)
    out = jax.block_until_ready(out)

    ref = _reference(x, w1, b1, w2, b2)
    assert out.shape == (N, C, H, W), out.shape
    err = float(jnp.max(jnp.abs(out - ref)))
    assert jnp.allclose(out, ref, atol=1e-5, rtol=1e-5), err

    print("KERNEL_OK")
</pallas_src>

<mosaic_0001>
module attributes {stable_mosaic.version = 11 : i64} {
  func.func @_ffn_kernel(%arg0: i32, %arg1: i32, %arg2: memref<1x4x256xf32, #tpu.memory_space<vmem>>, %arg3: memref<8x4xf32, #tpu.memory_space<vmem>>, %arg4: memref<8x1xf32, #tpu.memory_space<vmem>>, %arg5: memref<8x8xf32, #tpu.memory_space<vmem>>, %arg6: memref<8x1xf32, #tpu.memory_space<vmem>>, %arg7: memref<1x8x256xf32, #tpu.memory_space<vmem>>) attributes {dimension_semantics = [#tpu.dimension_semantics<parallel>, #tpu.dimension_semantics<parallel>], iteration_bounds = array<i64: 2, 1>, scalar_prefetch = 0 : i64, scratch_operands = 0 : i64, tpu.core_type = #tpu.core_type<tc>, window_params = [{transform_indices = @transform_0, window_bounds = array<i64: 1, 4, 256>}, {pipeline_mode = #tpu.pipeline_mode<synchronous>, transform_indices = @transform_1, window_bounds = array<i64: 8, 4>}, {pipeline_mode = #tpu.pipeline_mode<synchronous>, transform_indices = @transform_2, window_bounds = array<i64: 8, 1>}, {pipeline_mode = #tpu.pipeline_mode<synchronous>, transform_indices = @transform_3, window_bounds = array<i64: 8, 8>}, {pipeline_mode = #tpu.pipeline_mode<synchronous>, transform_indices = @transform_4, window_bounds = array<i64: 8, 1>}, {transform_indices = @transform_5, window_bounds = array<i64: 1, 8, 256>}]} {
    %c0 = arith.constant 0 : index
    %c0_0 = arith.constant 0 : index
    %0 = vector.load %arg3[%c0, %c0_0] : memref<8x4xf32, #tpu.memory_space<vmem>>, vector<8x4xf32>
    %c0_1 = arith.constant 0 : index
    %c0_2 = arith.constant 0 : index
    %1 = vector.load %arg4[%c0_1, %c0_2] : memref<8x1xf32, #tpu.memory_space<vmem>>, vector<8x1xf32>
    %c0_3 = arith.constant 0 : index
    %c0_4 = arith.constant 0 : index
    %2 = vector.load %arg5[%c0_3, %c0_4] : memref<8x8xf32, #tpu.memory_space<vmem>>, vector<8x8xf32>
    %c0_5 = arith.constant 0 : index
    %c0_6 = arith.constant 0 : index
    %3 = vector.load %arg6[%c0_5, %c0_6] : memref<8x1xf32, #tpu.memory_space<vmem>>, vector<8x1xf32>
    %c0_7 = arith.constant 0 : index
    %c0_8 = arith.constant 0 : index
    %c0_9 = arith.constant 0 : index
    %4 = vector.load %arg2[%c0_7, %c0_8, %c0_9] : memref<1x4x256xf32, #tpu.memory_space<vmem>>, vector<1x4x256xf32>
    %5 = vector.shape_cast %4 : vector<1x4x256xf32> to vector<4x256xf32>
    %cst = arith.constant dense<0.000000e+00> : vector<8x256xf32>
    %6 = tpu.matmul %0, %5, %cst {dimension_numbers = #tpu.dot_dimension_numbers<[1], [0], [0], [1], [0, 0, 1, 1], [], []>} : vector<8x4xf32>, vector<4x256xf32>, vector<8x256xf32> -> vector<8x256xf32>
    %7 = vector.broadcast %1 : vector<8x1xf32> to vector<8x256xf32>
    %8 = arith.addf %6, %7 : vector<8x256xf32>
    %cst_10 = arith.constant 0.000000e+00 : f32
    %9 = vector.broadcast %cst_10 : f32 to vector<8x256xf32>
    %10 = arith.maximumf %8, %9 : vector<8x256xf32>
    %cst_11 = arith.constant dense<0.000000e+00> : vector<8x256xf32>
    %11 = tpu.matmul %2, %10, %cst_11 {dimension_numbers = #tpu.dot_dimension_numbers<[1], [0], [0], [1], [0, 0, 1, 1], [], []>} : vector<8x8xf32>, vector<8x256xf32>, vector<8x256xf32> -> vector<8x256xf32>
    %12 = vector.broadcast %3 : vector<8x1xf32> to vector<8x256xf32>
    %13 = arith.addf %11, %12 : vector<8x256xf32>
    %c0_12 = arith.constant 0 : index
    %c0_13 = arith.constant 0 : index
    %c0_14 = arith.constant 0 : index
    %14 = vector.load %arg7[%c0_12, %c0_13, %c0_14] : memref<1x8x256xf32, #tpu.memory_space<vmem>>, vector<1x8x256xf32>
    %15 = vector.shape_cast %14 : vector<1x8x256xf32> to vector<8x256xf32>
    %16 = vector.shape_cast %13 : vector<8x256xf32> to vector<1x8x256xf32>
    tpu.vector_store %arg7[%c0_12, %c0_13, %c0_14], %16 {strides = array<i32>} : memref<1x8x256xf32, #tpu.memory_space<vmem>>, vector<1x8x256xf32>,
    return
  }
  func.func @transform_0(%arg0: i32, %arg1: i32) -> (i32, i32, i32) {
    %c0_i32 = arith.constant 0 : i32
    %c0_i32_0 = arith.constant 0 : i32
    return %arg0, %c0_i32, %arg1 : i32, i32, i32
  }
  func.func @transform_1(%arg0: i32, %arg1: i32) -> (i32, i32) {
    %c0_i32 = arith.constant 0 : i32
    %c0_i32_0 = arith.constant 0 : i32
    %c0_i32_1 = arith.constant 0 : i32
    return %c0_i32, %c0_i32_0 : i32, i32
  }
  func.func @transform_2(%arg0: i32, %arg1: i32) -> (i32, i32) {
    %c0_i32 = arith.constant 0 : i32
    %c0_i32_0 = arith.constant 0 : i32
    %c0_i32_1 = arith.constant 0 : i32
    return %c0_i32, %c0_i32_0 : i32, i32
  }
  func.func @transform_3(%arg0: i32, %arg1: i32) -> (i32, i32) {
    %c0_i32 = arith.constant 0 : i32
    %c0_i32_0 = arith.constant 0 : i32
    %c0_i32_1 = arith.constant 0 : i32
    return %c0_i32, %c0_i32_0 : i32, i32
  }
  func.func @transform_4(%arg0: i32, %arg1: i32) -> (i32, i32) {
    %c0_i32 = arith.constant 0 : i32
    %c0_i32_0 = arith.constant 0 : i32
    %c0_i32_1 = arith.constant 0 : i32
    return %c0_i32, %c0_i32_0 : i32, i32
  }
  func.func @transform_5(%arg0: i32, %arg1: i32) -> (i32, i32, i32) {
    %c0_i32 = arith.constant 0 : i32
    %c0_i32_0 = arith.constant 0 : i32
    return %arg0, %c0_i32, %arg1 : i32, i32, i32
  }
}

</mosaic_0001>

<bundles_post_ra>
// kernel: tpu_custom_call.1
= control target key start
LH: loop header
LB: loop body
LE: loop exit
PB: predicated region body
PF: predicated region fallthrough
CT: control target
= control target key end

     0   :  { %10 = vsyncpa [#allocation3], 0  ;;  %s838_s0 = inlined_call_operand.vmem [shape: f32[2,4,256], index: 0, kind: input, shape index: {}]   ;;  %s839_s1 = inlined_call_operand.vmem [shape: f32[8,4], index: 1, kind: input, shape index: {}]   ;;  %s840_s2 = inlined_call_operand.vmem [shape: f32[8,1], index: 2, kind: input, shape index: {}]   ;;  %s841_s3 = inlined_call_operand.vmem [shape: f32[8,8], index: 3, kind: input, shape index: {}]   ;;  %s842_s4 = inlined_call_operand.vmem [shape: f32[8,1], index: 4, kind: input, shape index: {}]   ;;  %s843_s5 = inlined_call_operand.hbm [shape: f32[2,8,256], index: 5, kind: output, shape index: {}]  }
   0x1   :  { %12 = vsyncpa [#allocation3 + $0x1], 0  ;;  %s714_s18 = smov 0   ;;  %s716_s19 = smov 0  }
   0x2   :  { %s718_s20 = smov 0   ;;  %s720_s21 = smov 0  }
   0x3   :  { %s722_s22 = smov 0   ;;  %s724_s23 = smov 0  }
   0x4 LB: > { %s523_s24 = sadd.s32 4294967295, %s679_s23   ;;  %s524_s25 = sadd.s32 4294967294, %s679_s23   ;;  %s679_s23 = sphi %s724_s23, %s18_s23   ;;  %s675_s22 = sphi %s722_s22, %s850_s22   ;;  %s671_s21 = sphi %s720_s21, %s849_s21   ;;  %s667_s20 = sphi %s718_s20, %s848_s20   ;;  %s663_s19 = sphi %s716_s19, %s847_s19   ;;  %s659_s18 = sphi %s714_s18, %s846_s18  }
   0x5   : > { %s30_s26 = sadd.s32 1, %s675_s22  ;;  %s151_s27 = sadd.s32 1, %s667_s20 }
   0x6   : > { %p32_p0 = scmp.ge.s32.totalorder %s30_s26, 2  ;;  %p161_p1 = scmp.ne.s32.totalorder %s667_s20, %s663_s19 }
   0x7   : > { %p162_p2 = scmp.eq.s32.totalorder %s523_s24, 1  ;;  %p167_p3 = scmp.ne.s32.totalorder %s663_s19, %s659_s18 }
   0x8   : > { %s852_s26 = smov (%p32_p0, %s30_s26), 0  ;;  %p168_p5 = scmp.eq.s32.totalorder %s524_s25, 1 }
   0x9   : > { %p754_p4 = por %p162_p2, %p161_p1  ;;  %s146_s29 = ssub.s32 %s675_s22, %s852_s26 }
   0xa   : > { %p527_p6 = scmp.ge.s32.totalorder %s679_s23, 1  ;;  %p149_p7 = scmp.eq.s32.totalorder %s146_s29, 0 }
   0xb   : > { %p761_p8 = por %p168_p5, %p167_p3  ;;  %p211_p9 = scmp.lt.s32.totalorder %s679_s23, 3 }
   0xc   : > { %s767_s6 = scalar_select %p149_p7, %s667_s20, %s151_s27  }
   0xd   : > { %p212_p10 = pnand %p527_p6, %p211_p9 }
   0xe   : > { %p244_p11 = scmp.lt.s32.totalorder (!%p212_p10), %s671_s21, 1  ;;  %v681_v0 = vmov (!%p212_p10), 0.0   ;;  %v682_v1 = vmov (!%p212_p10), 0   ;;  %v255_v2 = vld [vmem:[%s840_s2] sm:$0xff] (!%p212_p10)  ;;  %vm270_vm0 = vcmask (!%p212_p10), 1043456   ;;  %vm266_vm1 = vcmask (!%p212_p10), 31744  }
   0xf   : > { %215 = sbr.rel (%p212_p10) target bundleno = 479 (0x1df), region = 40  ;;  %339 = vmatprep.mubr.f32.mxu0 (!%p212_p10), %v681_v0  ;;  %599 = vset.pattern.permute.xlu0 (!%p212_p10), %v682_v1  ;;  %v257_v3 = vld [vmem:[%s842_s4] sm:$0xff] (!%p212_p10)  ;;  %vm353_vm2 = vcmask (!%p212_p10), 64512   ;;  %s240_s27 = sand.u32 (!%p212_p10), 1, %s663_s19  }
  0x10   : > { %261 = vperm.xlu0 (!%p212_p10), %599, %v255_v2   ;;  %421 = vmatprep.mubr.f32.mxu1 (!%p212_p10), %v681_v0  ;;  %v254_v6 = vld [vmem:[%s839_s1] sm:$0xff] (!%p212_p10)  ;;  %s528_s29 = sshll.u32 (!%p212_p10), %s240_s27, 4  ;;  %s541_s7 = sshll.u32 (!%p212_p10), %s671_s21, 8 }
  0x11   : > { %v256_v14 = vld [vmem:[%s841_s3] sm:$0xff] (!%p212_p10)  ;;  %s242_s8 = scalar_lea.vmem (!%p212_p10), [#allocation2], %s528_s29  ;;  %s683_s14 = smov (!%p212_p10), [#allocation2]  }
  0x14   : > { %350 = vperm.xlu0 (!%p212_p10), %599, %v257_v3  }
  0x16   : > { %s245_s9 = scalar_select %p244_p11, %s671_s21, 1 }
  0x17   : > { %s431_s21 = scalar_lea.sflag [#allocation3], %s240_s27 }
  0x18   : > { %s540_s12 = sshll.u32 %s245_s9, 3  ;;  %s447_s9 = sshll.u32 %s242_s8, 4  ;;  %s793_s9 = int_to_ptr.vmem [resolvable:$true] %s447_s9 }
  0x19   : > { %s251_s15 = scalar_lea.vmem %s838_s0, %s540_s12  ;;  %s791_s12 = scalar_lea.hbm %s843_s5, %s541_s7 }
  0x1a   : > { %v258_v4 = vld [vmem:[%s251_s15] sm:$0xff]  ;;  %s601_s13 = scalar_lea.vmem %s793_s9, 256  ;;  %s605_s15 = sshll.u32 %s683_s14, 4  ;;  %s606_s15 = int_to_ptr.vmem [resolvable:$false] %s605_s15 }
  0x1b   : > { %v265_v5 = vcombine.high %v258_v4, %v258_v4  ;;  %p602_p12 = scmp.ne.s32.totalorder %s793_s9, %s601_s13  ;;  %s607_s16 = scalar_lea.vmem %s606_s15, 512 }
  0x1c   : > { %p608_p1 = scmp.lt.s32.totalorder %s793_s9, %s606_s15  ;;  %p609_p2 = scmp.lt.s32.totalorder %s607_s16, %s601_s13 }
  0x1d   : > { %531 = vmatprep.subr.msk.mxu0 %vm270_vm0, %v265_v5  ;;  %p603_p13 = pnand %p602_p12, %p754_p4 }
  0x1e   : > { %532 = vmatpush1.msk.msra.mxu0 %vm270_vm0, %v258_v4  ;;  %p610_p3 = por %p609_p2, %p608_p1 }
  0x1f   : > { %533 = vmatmul.mubr.msk.f32.vlgmr.msra.gmra.mrb[0].mxu0 %vm266_vm1, %v254_v6  ;;  %p604_p0 = pneg %p603_p13 }
  0x21   : > { %p611_p5 = pnand %p610_p3, %p604_p0 }
  0x8f   : > { %v262_v7 = vpop.permute.xlu0 %261 }
  0x93   : > { %v351_v15 = vpop.permute.xlu0 %350 }
  0xf2   : > { %v341_v8 = vpop.f32.mrb[0].mxu0 }
  0xf3   : > { %v342_v9 = vadd.f32 %v341_v8, %v262_v7  ;;  %v343_v10 = vpop.f32.mrb[1].mxu0 }
  0xf4   : > { %v344_v11 = vadd.f32 %v343_v10, %v262_v7 }
  0xf5   : > { %v346_v13 = vmax.f32 %v342_v9, 0.0 }
  0xf6   : > { %v347_v12 = vmax.f32 %v344_v11, 0.0 }
  0xf8   : > { %357 = vmatprep.subr.mxu1 %v347_v12 }
  0xf9   : > { %358 = vmatpush1.msra.mxu1 %v346_v13 }
  0xfa   : > { %534 = vmatmul.mubr.msk.f32.vlgmr.msra.gmra.mrb[0].mxu1 %vm353_vm2, %v256_v14 }
 0x1cd   : > { %v423_v16 = vpop.f32.mrb[0].mxu1 }
 0x1ce   : > { %v424_v17 = vadd.f32 %v423_v16, %v351_v15  ;;  %v425_v18 = vpop.f32.mrb[1].mxu1 }
 0x1cf   : > { %v426_v19 = vadd.f32 %v425_v18, %v351_v15 }
 0x1d0   : > { %428 = vst [vmem:[%s242_s8] sm:$0xff] %v424_v17 }
 0x1d1   : > { %429 = vst [vmem:[%s242_s8 + $0x8] sm:$0xff] %v426_v19 }
 0x1d2   : > { %614 = shalt.err (!%p611_p5)
}
 0x1d3   : > { %s615_s17 = scalar_lea.hbm %s791_s12, 256  ;;  %s619_s27 = scalar_lea.hbm %s843_s5, 512 }
 0x1d4   : > { %p616_p6 = scmp.ne.s32.totalorder %s791_s12, %s615_s17  ;;  %p620_p10 = scmp.lt.u32.totalorder %s791_s12, %s843_s5 }
 0x1d5   : > { %p621_p11 = scmp.lt.u32.totalorder %s619_s27, %s615_s17  ;;  %p623_p13 = scmp.lt.u32.totalorder %s615_s17, %s791_s12 }
 0x1d6   : > { %p617_p7 = pnand %p616_p6, %p754_p4 }
 0x1d7   : > { %p622_p12 = por %p621_p11, %p620_p10 }
 0x1d8   : > { %p618_p9 = pneg %p617_p7 }
 0x1d9   : > { %p624_p0 = por %p623_p13, %p622_p12 }
 0x1db   : > { %p625_p1 = pnand %p624_p0, %p618_p9 }
 0x1dd   : > { %628 = shalt.err (!%p625_p1)
}
 0x1de   : > { %542 = dma.vmem_to_hbm [thread:$0]  (%p754_p4), %s793_s9, 256, %s791_s12, %s431_s21  }
 0x1df PF: > { %p548_p2 = scmp.ge.s32.totalorder %s679_s23, 2  ;;  %s459_s8 = sand.u32 1, %s659_s18  }
 0x1e0   : > { %s460_s10 = scalar_lea.sflag [#allocation3], %s459_s8 }
 0x1e1   : > { %p545_p3 = pnand %p548_p2, %p761_p8 }
 0x1e3   : > { %654 = dma.done.wait (!%p545_p3), %s460_s10, 256  }
 0x1e4   : > { %656 = vsyncadd (!%p545_p3), %s460_s10, 4294967040  ;;  %s18_s23 = sadd.s32 1, %s679_s23   ;;  %s846_s18 = smov %s663_s19 }
 0x1e5   : > { %p15_p5 = scmp.ge.s32.totalorder %s18_s23, 4   ;;  %s847_s19 = smov %s667_s20 }
 0x1e6   : > { %s848_s20 = smov %s767_s6  ;;  %s849_s21 = smov %s675_s22 }
 0x1e7   : > { %s850_s22 = smov %s852_s26  ;;  %17 = sbr.rel (!%p15_p5) target bundleno = 4 (0x4), region = 75 }
 0x1ee   :  { %465 = vsyncpa [#allocation3], 1 }
 0x1ef   :  { %467 = vsyncpa [#allocation3 + $0x1], 1 }

</bundles_post_ra>
